<compile_context>
chip_gen: v7x
topology: tpu7x:2x2x1
jax: 0.10.0
libtpu: 0.0.40
codegen_flags: <defaults>
</compile_context>

<pallas_src>
import jax
import jax.numpy as jnp
from jax.experimental import pallas as pl
from jax.experimental.pallas import tpu as pltpu


def _sds_kernel(scal_ref, lat_ref, noise_ref, np_ref, latents_noisy_ref, grad_ref):
    # scalars (SMEM): [sqrt(alpha_t), sqrt(1 - alpha_t), w = 1 - alpha_t, guidance_scale]
    sqrt_a = scal_ref[0]
    sqrt_1ma = scal_ref[1]
    w = scal_ref[2]
    gs = scal_ref[3]

    lat = lat_ref[...]
    nz = noise_ref[...]

    # scheduler.add_noise  (cast is a no-op for the default f32 output dtype)
    latents_noisy_ref[...] = (sqrt_a * lat + sqrt_1ma * nz).astype(
        latents_noisy_ref.dtype)

    # classifier-free guidance combine; uncond rows are np_ref[0], text rows np_ref[1]
    np_u = np_ref[0]
    np_t = np_ref[1]
    noise_pred = np_t + gs * (np_t - np_u)

    # SDS gradient
    grad_ref[...] = jnp.nan_to_num(w * (noise_pred - nz))


def _choose_lane_width(total):
    """Largest lane width (multiple of 128) whose row count is a multiple of 8."""
    for lanes in (4096, 2048, 1024, 512, 256, 128):
        if total % lanes == 0 and (total // lanes) % 8 == 0:
            return lanes
    for lanes in (512, 256, 128):      # fallback: lane-dense but rows not 8-aligned
        if total % lanes == 0:
            return lanes
    raise ValueError(f"total element count {total} must be a multiple of 128")


def _choose_row_tile(rows, lanes, max_block_bytes):
    """Single block if it fits; else the largest 8-aligned row divisor that fits."""
    if rows * lanes * 4 <= max_block_bytes:
        return rows
    best = None
    for tr in range(8, rows, 8):
        if rows % tr == 0 and tr * lanes * 4 <= max_block_bytes:
            best = tr
    return best if best is not None else rows


def sds_train_step(latents, noise, noise_pred, alphas_cumprod, t,
                   guidance_scale=100.0, max_block_bytes=2 << 20,
                   latents_noisy_dtype=jnp.float32):
    """Fused SDS step. latents/noise: [B,C,H,W] f32, noise_pred: [2B,C,H,W] f32."""
    B, C, H, W = latents.shape
    N = C * H * W
    total = B * N

    lanes = _choose_lane_width(total)
    rows = total // lanes
    tile_rows = _choose_row_tile(rows, lanes, max_block_bytes)
    assert rows % tile_rows == 0
    n_steps = rows // tile_rows

    # Lane-dense 2-D slabs; row-major flatten keeps elementwise correspondence.
    lat2 = latents.reshape(rows, lanes).astype(jnp.float32)
    noise2 = noise.reshape(rows, lanes).astype(jnp.float32)
    # (2, rows, lanes): index 0 = uncond half, index 1 = text half (torch.chunk(2)).
    np2 = noise_pred.reshape(2, rows, lanes).astype(jnp.float32)

    alpha_t = alphas_cumprod[t].astype(jnp.float32)
    scal = jnp.stack([
        jnp.sqrt(alpha_t),
        jnp.sqrt(1.0 - alpha_t),
        1.0 - alpha_t,                      # w = 1 - alphas[t]
        jnp.float32(guidance_scale),
    ]).astype(jnp.float32)

    row_spec = pl.BlockSpec((tile_rows, lanes), lambda i: (i, 0))
    np_spec = pl.BlockSpec((2, tile_rows, lanes), lambda i: (0, i, 0))

    latents_noisy, grad = pl.pallas_call(
        _sds_kernel,
        out_shape=(jax.ShapeDtypeStruct((rows, lanes), latents_noisy_dtype),
                   jax.ShapeDtypeStruct((rows, lanes), jnp.float32)),
        grid=(n_steps,),
        in_specs=[
            pl.BlockSpec(memory_space=pltpu.SMEM),   # scalars
            row_spec,                                # latents
            row_spec,                                # noise
            np_spec,                                 # noise_pred (uncond + text)
        ],
        out_specs=(row_spec, row_spec),
        compiler_params=pltpu.CompilerParams(
            dimension_semantics=("parallel",)),
    )(scal, lat2, noise2, np2)

    # SpecifyGradient.forward returns ones([1]) of the input dtype.
    loss = jnp.ones((1,), dtype=latents.dtype)
    return (loss,
            latents_noisy.reshape(B, C, H, W),
            grad.reshape(B, C, H, W))


def ddim_alphas_cumprod(num_train_timesteps=1000,
                        beta_start=0.00085, beta_end=0.012):
    # DDIMScheduler "scaled_linear" schedule used by SD 1.5 / 2.1.
    betas = jnp.linspace(beta_start ** 0.5, beta_end ** 0.5,
                         num_train_timesteps, dtype=jnp.float32) ** 2
    return jnp.cumprod(1.0 - betas)


if __name__ == "__main__":
    key = jax.random.PRNGKey(0)
    k1, k2, k3 = jax.random.split(key, 3)

    # Small latent shapes consistent with the module (latents are B,4,H/8,W/8).
    B, C, H, W = 2, 4, 16, 16
    latents = jax.random.normal(k1, (B, C, H, W), dtype=jnp.float32)
    noise = jax.random.normal(k2, (B, C, H, W), dtype=jnp.float32)
    # Stand-in for self.unet(latent_model_input, t, text_embeddings).sample
    noise_pred = jax.random.normal(k3, (2 * B, C, H, W), dtype=jnp.float32)

    alphas_cumprod = ddim_alphas_cumprod()
    num_train_timesteps = alphas_cumprod.shape[0]
    min_step = int(num_train_timesteps * 0.02)
    max_step = int(num_train_timesteps * 0.98)
    t = jnp.asarray((min_step + max_step) // 2, dtype=jnp.int32)  # deterministic set_t
    guidance_scale = 100.0

    loss, latents_noisy, grad = sds_train_step(
        latents, noise, noise_pred, alphas_cumprod, t, guidance_scale)
    jax.block_until_ready((loss, latents_noisy, grad))

    # Pure-JAX reference check of the fused kernel.
    alpha_t = alphas_cumprod[t]
    ref_noisy = jnp.sqrt(alpha_t) * latents + jnp.sqrt(1.0 - alpha_t) * noise
    np_u, np_t = noise_pred[:B], noise_pred[B:]
    ref_pred = np_t + guidance_scale * (np_t - np_u)
    ref_grad = jnp.nan_to_num((1.0 - alpha_t) * (ref_pred - noise))

    assert loss.shape == (1,) and bool(jnp.all(loss == 1.0))
    assert jnp.allclose(latents_noisy, ref_noisy, atol=1e-5, rtol=1e-5)
    assert jnp.allclose(grad, ref_grad, atol=1e-4, rtol=1e-4)

    print("KERNEL_OK")
</pallas_src>

<mosaic_0001>
module attributes {stable_mosaic.version = 11 : i64} {
  func.func @_sds_kernel(%arg0: i32, %arg1: memref<4xf32, #tpu.memory_space<smem>>, %arg2: memref<8x256xf32, #tpu.memory_space<vmem>>, %arg3: memref<8x256xf32, #tpu.memory_space<vmem>>, %arg4: memref<2x8x256xf32, #tpu.memory_space<vmem>>, %arg5: memref<8x256xf32, #tpu.memory_space<vmem>>, %arg6: memref<8x256xf32, #tpu.memory_space<vmem>>) attributes {dimension_semantics = [#tpu.dimension_semantics<parallel>], iteration_bounds = array<i64: 1>, scalar_prefetch = 0 : i64, scratch_operands = 0 : i64, tpu.core_type = #tpu.core_type<tc>, window_params = [{transform_indices = @transform_0, window_bounds = array<i64: 4>}, {transform_indices = @transform_1, window_bounds = array<i64: 8, 256>}, {transform_indices = @transform_2, window_bounds = array<i64: 8, 256>}, {transform_indices = @transform_3, window_bounds = array<i64: 2, 8, 256>}, {transform_indices = @transform_4, window_bounds = array<i64: 8, 256>}, {transform_indices = @transform_5, window_bounds = array<i64: 8, 256>}]} {
    %c0 = arith.constant 0 : index
    %0 = memref.load %arg1[%c0] : memref<4xf32, #tpu.memory_space<smem>>
    %c1 = arith.constant 1 : index
    %1 = memref.load %arg1[%c1] : memref<4xf32, #tpu.memory_space<smem>>
    %c2 = arith.constant 2 : index
    %2 = memref.load %arg1[%c2] : memref<4xf32, #tpu.memory_space<smem>>
    %c3 = arith.constant 3 : index
    %3 = memref.load %arg1[%c3] : memref<4xf32, #tpu.memory_space<smem>>
    %c0_0 = arith.constant 0 : index
    %c0_1 = arith.constant 0 : index
    %4 = vector.load %arg2[%c0_0, %c0_1] : memref<8x256xf32, #tpu.memory_space<vmem>>, vector<8x256xf32>
    %c0_2 = arith.constant 0 : index
    %c0_3 = arith.constant 0 : index
    %5 = vector.load %arg3[%c0_2, %c0_3] : memref<8x256xf32, #tpu.memory_space<vmem>>, vector<8x256xf32>
    %6 = vector.broadcast %0 : f32 to vector<8x256xf32>
    %7 = arith.mulf %6, %4 : vector<8x256xf32>
    %8 = vector.broadcast %1 : f32 to vector<8x256xf32>
    %9 = arith.mulf %8, %5 : vector<8x256xf32>
    %10 = arith.addf %7, %9 : vector<8x256xf32>
    %c0_4 = arith.constant 0 : index
    %c0_5 = arith.constant 0 : index
    %11 = vector.load %arg5[%c0_4, %c0_5] : memref<8x256xf32, #tpu.memory_space<vmem>>, vector<8x256xf32>
    tpu.vector_store %arg5[%c0_4, %c0_5], %10 {strides = array<i32>} : memref<8x256xf32, #tpu.memory_space<vmem>>, vector<8x256xf32>,
    %c0_6 = arith.constant 0 : index
    %c0_7 = arith.constant 0 : index
    %c0_8 = arith.constant 0 : index
    %12 = vector.load %arg4[%c0_6, %c0_7, %c0_8] : memref<2x8x256xf32, #tpu.memory_space<vmem>>, vector<1x8x256xf32>
    %13 = vector.shape_cast %12 : vector<1x8x256xf32> to vector<8x256xf32>
    %c1_9 = arith.constant 1 : index
    %c0_10 = arith.constant 0 : index
    %c0_11 = arith.constant 0 : index
    %14 = vector.load %arg4[%c1_9, %c0_10, %c0_11] : memref<2x8x256xf32, #tpu.memory_space<vmem>>, vector<1x8x256xf32>
    %15 = vector.shape_cast %14 : vector<1x8x256xf32> to vector<8x256xf32>
    %16 = arith.subf %15, %13 : vector<8x256xf32>
    %17 = vector.broadcast %3 : f32 to vector<8x256xf32>
    %18 = arith.mulf %17, %16 : vector<8x256xf32>
    %19 = arith.addf %15, %18 : vector<8x256xf32>
    %20 = arith.subf %19, %5 : vector<8x256xf32>
    %21 = vector.broadcast %2 : f32 to vector<8x256xf32>
    %22 = arith.mulf %21, %20 : vector<8x256xf32>
    %23 = arith.cmpf one, %22, %22 : vector<8x256xf32>
    %cst = arith.constant 0.000000e+00 : f32
    %24 = vector.broadcast %cst : f32 to vector<8x256xf32>
    %25 = arith.select %23, %24, %22 : vector<8x256xi1>, vector<8x256xf32>
    %cst_12 = arith.constant 0x7F800000 : f32
    %26 = vector.broadcast %cst_12 : f32 to vector<8x256xf32>
    %27 = arith.cmpf oeq, %25, %26 : vector<8x256xf32>
    %cst_13 = arith.constant 3.40282347E+38 : f32
    %28 = vector.broadcast %cst_13 : f32 to vector<8x256xf32>
    %29 = arith.select %27, %28, %25 : vector<8x256xi1>, vector<8x256xf32>
    %cst_14 = arith.constant 0xFF800000 : f32
    %30 = vector.broadcast %cst_14 : f32 to vector<8x256xf32>
    %31 = arith.cmpf oeq, %29, %30 : vector<8x256xf32>
    %cst_15 = arith.constant -3.40282347E+38 : f32
    %32 = vector.broadcast %cst_15 : f32 to vector<8x256xf32>
    %33 = arith.select %31, %32, %29 : vector<8x256xi1>, vector<8x256xf32>
    %c0_16 = arith.constant 0 : index
    %c0_17 = arith.constant 0 : index
    %34 = vector.load %arg6[%c0_16, %c0_17] : memref<8x256xf32, #tpu.memory_space<vmem>>, vector<8x256xf32>
    tpu.vector_store %arg6[%c0_16, %c0_17], %33 {strides = array<i32>} : memref<8x256xf32, #tpu.memory_space<vmem>>, vector<8x256xf32>,
    return
  }
  func.func @transform_0(%arg0: i32) -> i32 {
    %c0_i32 = arith.constant 0 : i32
    %c0_i32_0 = arith.constant 0 : i32
    return %c0_i32 : i32
  }
  func.func @transform_1(%arg0: i32) -> (i32, i32) {
    %c0_i32 = arith.constant 0 : i32
    %c0_i32_0 = arith.constant 0 : i32
    return %arg0, %c0_i32 : i32, i32
  }
  func.func @transform_2(%arg0: i32) -> (i32, i32) {
    %c0_i32 = arith.constant 0 : i32
    %c0_i32_0 = arith.constant 0 : i32
    return %arg0, %c0_i32 : i32, i32
  }
  func.func @transform_3(%arg0: i32) -> (i32, i32, i32) {
    %c0_i32 = arith.constant 0 : i32
    %c0_i32_0 = arith.constant 0 : i32
    %c0_i32_1 = arith.constant 0 : i32
    return %c0_i32, %arg0, %c0_i32_0 : i32, i32, i32
  }
  func.func @transform_4(%arg0: i32) -> (i32, i32) {
    %c0_i32 = arith.constant 0 : i32
    %c0_i32_0 = arith.constant 0 : i32
    return %arg0, %c0_i32 : i32, i32
  }
  func.func @transform_5(%arg0: i32) -> (i32, i32) {
    %c0_i32 = arith.constant 0 : i32
    %c0_i32_0 = arith.constant 0 : i32
    return %arg0, %c0_i32 : i32, i32
  }
}

</mosaic_0001>

<bundles_post_ra>
// kernel: tpu_custom_call.1
= control target key start
LH: loop header
LB: loop body
LE: loop exit
PB: predicated region body
PF: predicated region fallthrough
CT: control target
= control target key end

     0   :  { %11 = vsyncpa [#allocation5], 0  ;;  %s403_s0 = inlined_call_operand.hbm [shape: f32[4], index: 0, kind: input, shape index: {}]   ;;  %s404_s1 = inlined_call_operand.hbm [shape: f32[8,256], index: 1, kind: input, shape index: {}]   ;;  %s405_s2 = inlined_call_operand.hbm [shape: f32[8,256], index: 2, kind: input, shape index: {}]   ;;  %s406_s3 = inlined_call_operand.hbm [shape: f32[2,8,256], index: 3, kind: input, shape index: {}]   ;;  %s407_s4 = inlined_call_operand.hbm [shape: f32[8,256], index: 4, kind: output, shape index: {0}]   ;;  %s408_s5 = inlined_call_operand.hbm [shape: f32[8,256], index: 5, kind: output, shape index: {1}]  }
   0x1   :  { %12 = vsyncpa [#allocation3], 0 }
   0x2   :  { %13 = vsyncpa [#allocation8], 0 }
   0x3   :  { %14 = vsyncpa [#allocation4], 0 }
   0x4   :  { %15 = vsyncpa [#allocation12], 0  ;;  %s290_s18 = smov [#allocation7]   ;;  %s291_s20 = smov [#allocation6]  }
   0x5   :  { %s40_s19 = sshll.u32 %s290_s18, 4  ;;  %s30_s21 = sshll.u32 %s291_s20, 4  ;;  %s41_s19 = int_to_ptr.vmem [resolvable:$true] %s40_s19  ;;  %s31_s21 = int_to_ptr.vmem [resolvable:$true] %s30_s21 }
   0x6   :  { %s160_s24 = scalar_lea.hbm %s405_s2, 256 }
   0x7   :  { %p161_p0 = scmp.ne.s32.totalorder %s405_s2, %s160_s24  ;;  %p164_p1 = scmp.lt.u32.totalorder %s160_s24, %s405_s2 }
   0x9   :  { %p166_p2 = pnand %p164_p1, %p161_p0 }
   0xb   :  { %169 = shalt.err (!%p166_p2)
}
   0xc   :  { %s170_s29 = scalar_lea.vmem %s41_s19, 256  ;;  %p175_p4 = scmp.lt.s32.totalorder %s41_s19, %s41_s19 }
   0xd   :  { %p171_p3 = scmp.ne.s32.totalorder %s41_s19, %s170_s29  ;;  %p176_p5 = scmp.lt.s32.totalorder %s170_s29, %s170_s29 }
   0xf   :  { %p177_p6 = por %p176_p5, %p175_p4 }
  0x11   :  { %p178_p7 = pnand %p177_p6, %p171_p3 }
  0x13   :  { %181 = shalt.err (!%p178_p7)
}
  0x14   :  { %43 = dma.hbm_to_vmem [thread:$0]  %s405_s2, 256, %s41_s19, [#allocation8]  }
  0x15   :  { %s182_s9 = scalar_lea.hbm %s403_s0, 16 }
  0x16   :  { %p183_p8 = scmp.ne.s32.totalorder %s403_s0, %s182_s9  ;;  %p186_p9 = scmp.lt.u32.totalorder %s182_s9, %s403_s0 }
  0x18   :  { %p188_p10 = pnand %p186_p9, %p183_p8 }
  0x1a   :  { %191 = shalt.err (!%p188_p10)
}
  0x1b   :  { %s292_s14 = smov [#allocation2]   ;;  %s192_s18 = scalar_lea.hbm %s404_s1, 256 }
  0x1c   :  { %23 = dma.hbm_to_smem %s403_s0, 16, %s292_s14, [#allocation5]  }
  0x1d   :  { %p193_p11 = scmp.ne.s32.totalorder %s404_s1, %s192_s18  ;;  %p196_p12 = scmp.lt.u32.totalorder %s192_s18, %s404_s1 }
  0x1f   :  { %p198_p13 = pnand %p196_p12, %p193_p11 }
  0x21   :  { %201 = shalt.err (!%p198_p13)
}
  0x22   :  { %s202_s24 = scalar_lea.vmem %s31_s21, 256  ;;  %p207_p1 = scmp.lt.s32.totalorder %s31_s21, %s31_s21 }
  0x23   :  { %p203_p0 = scmp.ne.s32.totalorder %s31_s21, %s202_s24  ;;  %p208_p2 = scmp.lt.s32.totalorder %s202_s24, %s202_s24 }
  0x25   :  { %p209_p3 = por %p208_p2, %p207_p1 }
  0x27   :  { %p210_p4 = pnand %p209_p3, %p203_p0 }
  0x29   :  { %213 = shalt.err (!%p210_p4)
}
  0x2a   :  { %33 = dma.hbm_to_vmem [thread:$0]  %s404_s1, 256, %s31_s21, [#allocation3]  }
  0x2b   :  { %s293_s26 = smov [#allocation9]   ;;  %s214_s30 = scalar_lea.hbm %s406_s3, 512 }
  0x2c   :  { %s49_s27 = sshll.u32 %s293_s26, 4  ;;  %p215_p5 = scmp.ne.s32.totalorder %s406_s3, %s214_s30  ;;  %s50_s27 = int_to_ptr.vmem [resolvable:$true] %s49_s27 }
  0x2d   :  { %p218_p6 = scmp.lt.u32.totalorder %s214_s30, %s406_s3 }
  0x2f   :  { %p220_p7 = pnand %p218_p6, %p215_p5 }
  0x31   :  { %223 = shalt.err (!%p220_p7)
}
  0x32   :  { %s224_s10 = scalar_lea.vmem %s50_s27, 512  ;;  %p229_p9 = scmp.lt.s32.totalorder %s50_s27, %s50_s27 }
  0x33   :  { %p225_p8 = scmp.ne.s32.totalorder %s50_s27, %s224_s10  ;;  %p230_p10 = scmp.lt.s32.totalorder %s224_s10, %s224_s10 }
  0x35   :  { %p231_p11 = por %p230_p10, %p229_p9 }
  0x37   :  { %p232_p12 = pnand %p231_p11, %p225_p8 }
  0x39   :  { %235 = shalt.err (!%p232_p12)
}
  0x3a   :  { %s294_s1 = smov 256   ;;  %s295_s21 = smov 16  }
  0x3b   :  { %55 = dma.hbm_to_vmem [thread:$0]  %s406_s3, 512, %s50_s27, [#allocation8], %s294_s1, %s294_s1, %s295_s21  }
  0x3c   :  { %280 = dma.done.wait [#allocation5], 16  }
  0x3d   :  { %281 = vsyncadd [#allocation5], 4294967280 }
  0x3e   :  { %282 = dma.done.wait [#allocation3], 256  }
  0x3f   :  { %283 = vsyncadd [#allocation3], 4294967040 }
  0x40   :  { %284 = dma.done.wait [#allocation8], 768  }
  0x41   :  { %285 = vsyncadd [#allocation8], 4294966528 }
  0x42   :  { %68 = sfence }
  0x43   :  { %s69_s13 = sld [smem:[#allocation2]]  ;;  %s149_s14 = sld [smem:[#allocation2 + $0x1]]  ;;  %v87_v0 = vld [vmem:[#allocation9] sm:$0xff]  ;;  %v90_v1 = vld [vmem:[#allocation9 + $0x10] sm:$0xff]  ;;  %v88_v2 = vld [vmem:[#allocation9 + $0x8] sm:$0xff] }
  0x44   :  { %s151_s15 = sld [smem:[#allocation2 + $0x3]]  ;;  %v91_v3 = vld [vmem:[#allocation9 + $0x18] sm:$0xff]  ;;  %s376_s16 = sld [smem:[#allocation2 + $0x2]]  ;;  %v73_v4 = vld [vmem:[#allocation6] sm:$0xff]  ;;  %v92_v5 = vsub.f32 %v90_v1, %v87_v0  ;;  %v74_v6 = vld [vmem:[#allocation6 + $0x8] sm:$0xff] }
  0x45   :  { %v93_v7 = vsub.f32 %v91_v3, %v88_v2  ;;  %v75_v8 = vld [vmem:[#allocation7] sm:$0xff]  ;;  %v76_v14 = vld [vmem:[#allocation7 + $0x8] sm:$0xff]  ;;  %s296_s3 = smov [#allocation10]  }
  0x46   :  { %s124_s2 = sshll.u32 %s296_s3, 4  ;;  %s125_s2 = int_to_ptr.vmem [resolvable:$true] %s124_s2 }
  0x47   :  { %s236_s17 = scalar_lea.vmem %s125_s2, 256  ;;  %p241_p0 = scmp.lt.s32.totalorder %s125_s2, %s125_s2 }
  0x48   :  { %p237_p13 = scmp.ne.s32.totalorder %s125_s2, %s236_s17  ;;  %p242_p1 = scmp.lt.s32.totalorder %s236_s17, %s236_s17 }
  0x49   :  { %v77_v9 = vstv %s69_s13  ;;  %v80_v10 = vstv %s149_s14 }
  0x4a   :  { %v78_v11 = vmul.f32 %v77_v9, %v73_v4  ;;  %v81_v12 = vmul.f32 %v80_v10, %v75_v8  ;;  %v94_v13 = vstv %s151_s15  ;;  %v79_v15 = vmul.f32 %v77_v9, %v74_v6  ;;  %p243_p2 = por %p242_p1, %p241_p0 }
  0x4b   :  { %v95_v16 = vmul.f32 %v94_v13, %v92_v5  ;;  %v82_v17 = vmul.f32 %v80_v10, %v76_v14  ;;  %v96_v18 = vmul.f32 %v94_v13, %v93_v7  ;;  %v101_v23 = vstv %s376_s16 }
  0x4c   :  { %v83_v19 = vadd.f32 %v81_v12, %v78_v11  ;;  %p244_p3 = pnand %p243_p2, %p237_p13 }
  0x4d   :  { %v97_v20 = vadd.f32 %v95_v16, %v90_v1  ;;  %v84_v21 = vadd.f32 %v82_v17, %v79_v15  ;;  %v98_v22 = vadd.f32 %v96_v18, %v91_v3 }
  0x4e   :  { %85 = vst [vmem:[#allocation10] sm:$0xff] %v83_v19 }
  0x4f   :  { %v99_v24 = vsub.f32 %v97_v20, %v75_v8  ;;  %86 = vst [vmem:[#allocation10 + $0x8] sm:$0xff] %v84_v21  ;;  %v100_v25 = vsub.f32 %v98_v22, %v76_v14 }
  0x50   :  { %247 = shalt.err (!%p244_p3)
}
  0x51   :  { %s248_s20 = scalar_lea.hbm %s407_s4, 256 }
  0x52   :  { %p249_p4 = scmp.ne.s32.totalorder %s407_s4, %s248_s20  ;;  %p252_p5 = scmp.lt.u32.totalorder %s248_s20, %s407_s4 }
  0x54   :  { %p254_p6 = pnand %p252_p5, %p249_p4 }
  0x56   :  { %257 = shalt.err (!%p254_p6)
}
  0x57   :  { %127 = dma.vmem_to_hbm [thread:$0]  %s125_s2, 256, %s407_s4, [#allocation4]   ;;  %v102_v26 = vmul.f32 %v101_v23, %v99_v24  ;;  %v103_v27 = vmul.f32 %v101_v23, %v100_v25 }
  0x58   :  { %s297_s27 = smov [#allocation11]  }
  0x59   :  { %vm104_vm0 = vcmp.ne.f32.partialorder %v102_v26, %v102_v26  ;;  %vm105_vm1 = vcmp.ne.f32.partialorder %v103_v27, %v103_v27  ;;  %s134_s28 = sshll.u32 %s297_s27, 4  ;;  %s135_s28 = int_to_ptr.vmem [resolvable:$true] %s134_s28 }
  0x5a   :  { %v106_v28 = vsel %vm104_vm0, 0.0, %v102_v26  ;;  %v107_v29 = vsel %vm105_vm1, 0.0, %v103_v27  ;;  %s258_s4 = scalar_lea.vmem %s135_s28, 256  ;;  %p263_p8 = scmp.lt.s32.totalorder %s135_s28, %s135_s28 }
  0x5b   :  { %vm108_vm2 = vcmp.eq.f32.partialorder %v106_v28, inf  ;;  %vm109_vm3 = vcmp.eq.f32.partialorder %v107_v29, inf  ;;  %p259_p7 = scmp.ne.s32.totalorder %s135_s28, %s258_s4  ;;  %p264_p9 = scmp.lt.s32.totalorder %s258_s4, %s258_s4 }
  0x5c   :  { %v110_v30 = vsel %vm108_vm2, 3.4028235e+38, %v106_v28  ;;  %v111_v31 = vsel %vm109_vm3, 3.4028235e+38, %v107_v29 }
  0x5d   :  { %vm112_vm4 = vcmp.eq.f32.partialorder %v110_v30, -inf  ;;  %vm113_vm5 = vcmp.eq.f32.partialorder %v111_v31, -inf  ;;  %p265_p10 = por %p264_p9, %p263_p8 }
  0x5e   :  { %v114_v32 = vsel %vm112_vm4, -3.4028235e+38, %v110_v30  ;;  %v115_v33 = vsel %vm113_vm5, -3.4028235e+38, %v111_v31 }
  0x5f   :  { %116 = vst [vmem:[#allocation11] sm:$0xff] %v114_v32  ;;  %117 = vst [vmem:[#allocation11 + $0x8] sm:$0xff] %v115_v33  ;;  %p266_p11 = pnand %p265_p10, %p259_p7 }
  0x61   :  { %269 = shalt.err (!%p266_p11)
}
  0x62   :  { %s270_s6 = scalar_lea.hbm %s408_s5, 256 }
  0x63   :  { %p271_p12 = scmp.ne.s32.totalorder %s408_s5, %s270_s6  ;;  %p274_p13 = scmp.lt.u32.totalorder %s270_s6, %s408_s5 }
  0x65   :  { %p276_p0 = pnand %p274_p13, %p271_p12 }
  0x67   :  { %279 = shalt.err (!%p276_p0)
}
  0x68   :  { %137 = dma.vmem_to_hbm [thread:$0]  %s135_s28, 256, %s408_s5, [#allocation12]  }
  0x69   :  { %286 = dma.done.wait [#allocation4], 256  }
  0x6a   :  { %287 = vsyncadd [#allocation4], 4294967040 }
  0x6b   :  { %288 = dma.done.wait [#allocation12], 256  }
  0x6c   :  { %289 = vsyncadd [#allocation12], 4294967040 }
  0x6d   :  { %144 = vsyncpa [#allocation3], 1 }
  0x6e   :  { %145 = vsyncpa [#allocation8], 1 }
  0x6f   :  { %146 = vsyncpa [#allocation4], 1 }
  0x70   :  { %147 = vsyncpa [#allocation12], 1 }
  0x71   :  { %148 = vsyncpa [#allocation5], 1 }

</bundles_post_ra>
